<compile_context>
chip_gen: v7x
topology: tpu7x:2x2x1
jax: 0.10.0
libtpu: 0.0.40
codegen_flags: <defaults>
</compile_context>

<pallas_src>
import jax
import jax.numpy as jnp
from jax.experimental import pallas as pl
from jax.experimental.pallas import tpu as pltpu


_LANE_WIDTH = 1024         # kernel-facing last dim (large multiple of 128)
_TARGET_BLOCK_ROWS = 512   # 512 * 1024 * 4 B = 2 MiB per f32 block


def _fermi_dirac_kernel(params_ref, dist_ref, out_ref):
    # params_ref (SMEM): [0] = r, [1] = 1/t
    r = params_ref[0]
    inv_t = params_ref[1]
    d = dist_ref[...].astype(jnp.float32)          # f32 intermediates (v5e bf16)
    z = (d - r) * inv_t
    probs = pl.reciprocal(jnp.exp(z) + 1.0, approx=False)
    out_ref[...] = probs.astype(out_ref.dtype)


def fermi_dirac_decoder(dist, r, t):
    """probs = 1 / (exp((dist - r) / t) + 1), elementwise, any input shape."""
    orig_shape = dist.shape
    orig_dtype = dist.dtype
    n = dist.size
    itemsize = jnp.dtype(orig_dtype).itemsize

    # ---- flatten + retile to a lane-dense slab -----------------------------
    lane = _LANE_WIDTH
    rows_unpadded = pl.cdiv(n, lane)
    block_rows = min(_TARGET_BLOCK_ROWS, rows_unpadded)
    rows = pl.cdiv(rows_unpadded, block_rows) * block_rows   # grid divides evenly
    padded_len = rows * lane

    flat = dist.reshape(-1)
    if padded_len != n:
        flat = jnp.pad(flat, (0, padded_len - n))
    x2d = flat.reshape(rows, lane)

    grid = (rows // block_rows,)

    # r and 1/t live in SMEM via scalar prefetch -> no recompile per (r, t).
    params = jnp.array([float(r), 1.0 / float(t)], dtype=jnp.float32)

    cost = pl.CostEstimate(
        flops=3 * n,
        transcendentals=n,
        bytes_accessed=2 * n * itemsize,
    )

    out2d = pl.pallas_call(
        _fermi_dirac_kernel,
        out_shape=jax.ShapeDtypeStruct((rows, lane), orig_dtype),
        grid_spec=pltpu.PrefetchScalarGridSpec(
            num_scalar_prefetch=1,
            grid=grid,
            in_specs=[pl.BlockSpec((block_rows, lane), lambda i, p: (i, 0))],
            out_specs=pl.BlockSpec((block_rows, lane), lambda i, p: (i, 0)),
        ),
        compiler_params=pltpu.CompilerParams(
            dimension_semantics=("parallel",),
            vmem_limit_bytes=32 * 1024 * 1024,
        ),
        cost_estimate=cost,
    )(params, x2d)

    return out2d.reshape(-1)[:n].reshape(orig_shape)


if __name__ == "__main__":
    # Module "parameters" (r, t are plain scalars, no learned weights).
    r = 2.0
    t = 1.0

    key = jax.random.PRNGKey(0)
    k1, k2 = jax.random.split(key)

    # Case 1: distances for a batch of 8 nodes x 128 candidate edges.
    dist1 = jax.random.uniform(k1, (8, 128), dtype=jnp.float32,
                               minval=0.0, maxval=5.0)
    probs1 = jax.block_until_ready(fermi_dirac_decoder(dist1, r, t))
    ref1 = 1.0 / (jnp.exp((dist1 - r) / t) + 1.0)
    assert probs1.shape == dist1.shape
    assert jnp.allclose(probs1, ref1, atol=1e-6, rtol=1e-6)

    # Case 2: odd shape that exercises the flatten / pad / retile path.
    dist2 = jax.random.uniform(k2, (37, 53), dtype=jnp.float32,
                               minval=0.0, maxval=5.0)
    probs2 = jax.block_until_ready(fermi_dirac_decoder(dist2, r, t))
    ref2 = 1.0 / (jnp.exp((dist2 - r) / t) + 1.0)
    assert probs2.shape == dist2.shape
    assert jnp.allclose(probs2, ref2, atol=1e-6, rtol=1e-6)

    print("KERNEL_OK")
</pallas_src>

<mosaic_0001>
module attributes {stable_mosaic.version = 11 : i64} {
  func.func @_fermi_dirac_kernel(%arg0: i32, %arg1: memref<2xf32, #tpu.memory_space<smem>>, %arg2: memref<1x1024xf32, #tpu.memory_space<vmem>>, %arg3: memref<1x1024xf32, #tpu.memory_space<vmem>>) attributes {dimension_semantics = [#tpu.dimension_semantics<parallel>], iteration_bounds = array<i64: 1>, scalar_prefetch = 1 : i64, scratch_operands = 0 : i64, tpu.core_type = #tpu.core_type<tc>, window_params = [{transform_indices = @transform_0, window_bounds = array<i64: 1, 1024>}, {transform_indices = @transform_1, window_bounds = array<i64: 1, 1024>}]} {
    %c0 = arith.constant 0 : index
    %0 = memref.load %arg1[%c0] : memref<2xf32, #tpu.memory_space<smem>>
    %c1 = arith.constant 1 : index
    %1 = memref.load %arg1[%c1] : memref<2xf32, #tpu.memory_space<smem>>
    %c0_0 = arith.constant 0 : index
    %c0_1 = arith.constant 0 : index
    %2 = vector.load %arg2[%c0_0, %c0_1] : memref<1x1024xf32, #tpu.memory_space<vmem>>, vector<1x1024xf32>
    %3 = vector.broadcast %0 : f32 to vector<1x1024xf32>
    %4 = arith.subf %2, %3 : vector<1x1024xf32>
    %5 = vector.broadcast %1 : f32 to vector<1x1024xf32>
    %6 = arith.mulf %4, %5 : vector<1x1024xf32>
    %7 = math.exp %6 : vector<1x1024xf32>
    %cst = arith.constant 1.000000e+00 : f32
    %8 = vector.broadcast %cst : f32 to vector<1x1024xf32>
    %9 = arith.addf %7, %8 : vector<1x1024xf32>
    %10 = tpu.reciprocal %9 : vector<1x1024xf32> -> vector<1x1024xf32>
    %c0_2 = arith.constant 0 : index
    %c0_3 = arith.constant 0 : index
    %11 = vector.load %arg3[%c0_2, %c0_3] : memref<1x1024xf32, #tpu.memory_space<vmem>>, vector<1x1024xf32>
    tpu.vector_store %arg3[%c0_2, %c0_3], %10 {strides = array<i32>} : memref<1x1024xf32, #tpu.memory_space<vmem>>, vector<1x1024xf32>,
    return
  }
  func.func @transform_0(%arg0: i32, %arg1: memref<2xf32, #tpu.memory_space<smem>>) -> (i32, i32) {
    %c0_i32 = arith.constant 0 : i32
    %c0_i32_0 = arith.constant 0 : i32
    return %arg0, %c0_i32 : i32, i32
  }
  func.func @transform_1(%arg0: i32, %arg1: memref<2xf32, #tpu.memory_space<smem>>) -> (i32, i32) {
    %c0_i32 = arith.constant 0 : i32
    %c0_i32_0 = arith.constant 0 : i32
    return %arg0, %c0_i32 : i32, i32
  }
}

</mosaic_0001>

<bundles_post_ra>
// kernel: tpu_custom_call.1
= control target key start
LH: loop header
LB: loop body
LE: loop exit
PB: predicated region body
PF: predicated region fallthrough
CT: control target
= control target key end

     0   :  { %s175_s0 = inlined_call_operand.hbm [shape: f32[2], index: 0, kind: input, shape index: {}]   ;;  %s176_s1 = inlined_call_operand.hbm [shape: f32[1,1024], index: 1, kind: input, shape index: {}]   ;;  %s177_s2 = inlined_call_operand.hbm [shape: f32[1,1024], index: 2, kind: output, shape index: {}]  }
   0x1   :  { %s61_s11 = scalar_lea.hbm %s175_s0, 16 }
   0x2   :  { %p62_p0 = scmp.ne.s32.totalorder %s175_s0, %s61_s11  ;;  %p65_p1 = scmp.lt.u32.totalorder %s61_s11, %s175_s0 }
   0x4   :  { %p67_p2 = pnand %p65_p1, %p62_p0 }
   0x6   :  { %70 = shalt.err (!%p67_p2)  }
   0x7   :  { %s121_s16 = smov [#allocation3]  }
   0x8   :  { %8 = dma.hbm_to_smem %s175_s0, 16, %s121_s16, [#allocation2] }
   0x9   :  { %115 = dma.done.wait [#allocation2], 16 }
   0xa   :  { %116 = vsyncadd [#allocation2], 4294967280 }
   0xb   :  { %10 = sfence }
   0xc   :  { %11 = vsyncpa [#allocation5], 0 }
   0xd   :  { %12 = vsyncpa [#allocation6], 0  ;;  %s122_s19 = smov [#allocation4]   ;;  %s71_s23 = scalar_lea.hbm %s176_s1, 128 }
   0xe   :  { %s19_s20 = sshll.u32 %s122_s19, 4  ;;  %p72_p3 = scmp.ne.s32.totalorder %s176_s1, %s71_s23  ;;  %s20_s20 = int_to_ptr.vmem [resolvable:$true] %s19_s20 }
   0xf   :  { %p75_p4 = scmp.lt.u32.totalorder %s71_s23, %s176_s1 }
  0x11   :  { %p77_p5 = pnand %p75_p4, %p72_p3 }
  0x13   :  { %80 = shalt.err (!%p77_p5)
}
  0x14   :  { %s81_s0 = scalar_lea.vmem %s20_s20, 128  ;;  %p86_p7 = scmp.lt.s32.totalorder %s20_s20, %s20_s20 }
  0x15   :  { %p82_p6 = scmp.ne.s32.totalorder %s20_s20, %s81_s0  ;;  %p87_p8 = scmp.lt.s32.totalorder %s81_s0, %s81_s0 }
  0x17   :  { %p88_p9 = por %p87_p8, %p86_p7 }
  0x19   :  { %p89_p10 = pnand %p88_p9, %p82_p6 }
  0x1b   :  { %92 = shalt.err (!%p89_p10)
}
  0x1c   :  { %22 = dma.hbm_to_vmem [thread:$0]  %s176_s1, 128, %s20_s20, [#allocation5]  }
  0x1d   :  { %117 = dma.done.wait [#allocation5], 128  }
  0x1e   :  { %118 = vsyncadd [#allocation5], 4294967168  ;;  %s26_s30 = sld [smem:[#allocation3]]  ;;  %s53_s3 = sld [smem:[#allocation3 + $0x1]]  ;;  %v28_v0 = vld [vmem:[#allocation4] sm:$0xff] }
  0x1f   :  { %s123_s4 = smov [#allocation7]  }
  0x20   :  { %s44_s5 = sshll.u32 %s123_s4, 4  ;;  %s45_s5 = int_to_ptr.vmem [resolvable:$true] %s44_s5 }
  0x21   :  { %s93_s1 = scalar_lea.vmem %s45_s5, 128  ;;  %p98_p12 = scmp.lt.s32.totalorder %s45_s5, %s45_s5 }
  0x22   :  { %p94_p11 = scmp.ne.s32.totalorder %s45_s5, %s93_s1  ;;  %p99_p13 = scmp.lt.s32.totalorder %s93_s1, %s93_s1 }
  0x24   :  { %v29_v1 = vstv %s26_s30  ;;  %v31_v2 = vstv %s53_s3  ;;  %p100_p0 = por %p99_p13, %p98_p12 }
  0x25   :  { %v30_v3 = vsub.f32 %v28_v0, %v29_v1 }
  0x26   :  { %p101_p1 = pnand %p100_p0, %p94_p11 }
  0x27   :  { %v32_v4 = vmul.f32 %v31_v2, %v30_v3 }
  0x29   :  { %v33_v5 = vmul.f32 1.442695, %v32_v4 }
  0x2b   :  { %57 = vpow2.f32 %v33_v5 }
  0x35   :  { %v58_v6 = vpop.eup %57 }
  0x36   :  { %v35_v7 = vadd.f32 1.0, %v58_v6 }
  0x38   :  { %59 = vrcp.f32 %v35_v7 }
  0x42   :  { %v60_v8 = vpop.eup %59 }
  0x43   :  { %37 = vst [vmem:[#allocation7] sm:$0xff] %v60_v8 }
  0x44   :  { %104 = shalt.err (!%p101_p1)
}
  0x45   :  { %s105_s8 = scalar_lea.hbm %s177_s2, 128 }
  0x46   :  { %p106_p2 = scmp.ne.s32.totalorder %s177_s2, %s105_s8  ;;  %p109_p3 = scmp.lt.u32.totalorder %s105_s8, %s177_s2 }
  0x48   :  { %p111_p4 = pnand %p109_p3, %p106_p2 }
  0x4a   :  { %114 = shalt.err (!%p111_p4)
}
  0x4b   :  { %47 = dma.vmem_to_hbm [thread:$0]  %s45_s5, 128, %s177_s2, [#allocation6]  }
  0x4c   :  { %119 = dma.done.wait [#allocation6], 128  }
  0x4d   :  { %120 = vsyncadd [#allocation6], 4294967168 }
  0x4e   :  { %51 = vsyncpa [#allocation5], 1 }
  0x4f   :  { %52 = vsyncpa [#allocation6], 1 }

</bundles_post_ra>
